<compile_context>
chip_gen: v6e
topology: v6e:2x2x1
jax: 0.10.0
libtpu: 0.0.40
codegen_flags: <defaults>
</compile_context>

<pallas_src>
import functools

import jax
import jax.numpy as jnp
from jax.experimental import pallas as pl
from jax.experimental.pallas import tpu as pltpu


def _ce_kernel(x_ref, t_ref, sum_ref, cnt_ref, acc_ref, ccnt_ref, *,
               hw, tile_hw, ignore_index):
    j = pl.program_id(1)
    n_j = pl.num_programs(1)

    @pl.when(j == 0)
    def _():
        acc_ref[...] = jnp.zeros_like(acc_ref)
        ccnt_ref[...] = jnp.zeros_like(ccnt_ref)

    x = x_ref[...].astype(jnp.float32)          # (1, C, T): classes on sublane, pixels on lane
    t = t_ref[...]                              # (1, 1, T) int32

    # Numerically stable log-softmax over the class (sublane) axis.
    m = jnp.max(x, axis=1, keepdims=True)                                 # (1, 1, T)
    d = x - m                                                             # (1, C, T)
    sum_e = jnp.sum(jnp.exp(d), axis=1, keepdims=True)                    # (1, 1, T)

    # Gather the (shifted) target logit via a class-index compare; the m terms
    # cancel:  nll = logsumexp(x) - x[t] = log(sum_e) - d[t].
    cls = jax.lax.broadcasted_iota(jnp.int32, x.shape, 1)                 # (1, C, T)
    picked = jnp.sum(jnp.where(cls == t, d, 0.0), axis=1, keepdims=True)  # (1, 1, T)
    nll = jnp.log(sum_e) - picked                                         # (1, 1, T)

    valid = t != ignore_index
    if hw % tile_hw != 0:  # static: emit a tail mask only if a partial block exists
        pos = j * tile_hw + jax.lax.broadcasted_iota(jnp.int32, t.shape, 2)
        valid = jnp.logical_and(valid, pos < hw)

    # Elementwise (VPU) accumulation; the scalar reduce is deferred to the end.
    acc_ref[...] += jnp.where(valid, nll, 0.0)
    ccnt_ref[...] += valid.astype(jnp.float32)

    @pl.when(j == n_j - 1)
    def _():
        sum_ref[...] = jnp.broadcast_to(
            jnp.sum(acc_ref[...]), sum_ref.shape).astype(jnp.float32)
        cnt_ref[...] = jnp.broadcast_to(
            jnp.sum(ccnt_ref[...]), cnt_ref.shape).astype(jnp.float32)


def _pick_tile_hw(hw, c, itemsize, vmem_budget=8 * 1024 * 1024, max_tile=32768):
    """Largest lane-aligned spatial tile that fits double-buffered in scoped VMEM
    (conservative budget so the default scoped limit works on v5e/v6e/v7x)."""
    if hw < 128 or (hw % 128 != 0 and hw <= 1024):
        return hw  # whole spatial extent as one block (block dim == array dim is allowed)
    # 2x double-buffered logits + 2x targets buffers + the two f32 accumulators.
    per_px = 2 * (c * itemsize + 4) + 64
    cap = hw if hw % 128 == 0 else ((hw + 127) // 128) * 128
    tile = min(max_tile, cap, vmem_budget // per_px)
    return max(128, (tile // 128) * 128)


def cross_entropy_loss_2d(inputs, targets, *, ignore_index=-100):
    """inputs: (N, C, H, W) float, targets: (N, H, W) int -> scalar mean loss."""
    # TODO(synk): optional per-class `weight` of nn.NLLLoss not implemented (module default is None).
    N, C, H, W = inputs.shape
    HW = H * W

    # Free views of the native layout (no transpose, no extra HBM traffic).
    x3 = inputs.reshape(N, C, HW)
    t3 = targets.reshape(N, 1, HW).astype(jnp.int32)

    tile_hw = _pick_tile_hw(HW, C, inputs.dtype.itemsize)
    num_j = pl.cdiv(HW, tile_hw)

    kernel = functools.partial(_ce_kernel, hw=HW, tile_hw=tile_hw,
                               ignore_index=ignore_index)

    sums, cnts = pl.pallas_call(
        kernel,
        out_shape=(jax.ShapeDtypeStruct((N, 1, 128), jnp.float32),
                   jax.ShapeDtypeStruct((N, 1, 128), jnp.float32)),
        grid_spec=pltpu.PrefetchScalarGridSpec(
            num_scalar_prefetch=0,
            grid=(N, num_j),
            in_specs=[
                pl.BlockSpec((1, C, tile_hw), lambda n, j: (n, 0, j)),
                pl.BlockSpec((1, 1, tile_hw), lambda n, j: (n, 0, j)),
            ],
            out_specs=[
                pl.BlockSpec((1, 1, 128), lambda n, j: (n, 0, 0)),
                pl.BlockSpec((1, 1, 128), lambda n, j: (n, 0, 0)),
            ],
            scratch_shapes=[
                pltpu.VMEM((1, 1, tile_hw), jnp.float32),
                pltpu.VMEM((1, 1, tile_hw), jnp.float32),
            ],
        ),
        compiler_params=pltpu.CompilerParams(
            dimension_semantics=("parallel", "arbitrary"),
        ),
    )(x3, t3)

    total = jnp.sum(sums[:, 0, 0])
    count = jnp.sum(cnts[:, 0, 0])
    return total / count


def _reference(inputs, targets, ignore_index=-100):
    # Pure-JAX reference: NLLLoss(log_softmax(inputs, dim=1), targets), mean
    # over non-ignored pixels (PyTorch default ignore_index=-100).
    logp = jax.nn.log_softmax(inputs.astype(jnp.float32), axis=1)  # (N,C,H,W)
    idx = jnp.clip(targets.astype(jnp.int32), 0, inputs.shape[1] - 1)
    picked = jnp.take_along_axis(logp, idx[:, None, :, :], axis=1)[:, 0]  # (N,H,W)
    valid = targets != ignore_index
    return -jnp.sum(jnp.where(valid, picked, 0.0)) / jnp.sum(valid)


if __name__ == "__main__":
    key = jax.random.PRNGKey(0)
    k_x, k_t = jax.random.split(key)

    N, C, H, W = 2, 4, 16, 16
    x = jax.random.normal(k_x, (N, C, H, W), dtype=jnp.float32)
    t = jax.random.randint(k_t, (N, H, W), 0, C, dtype=jnp.int32)

    loss = cross_entropy_loss_2d(x, t)
    loss = jax.block_until_ready(loss)

    ref = _reference(x, t)
    assert jnp.allclose(loss, ref, rtol=1e-5, atol=1e-5), (loss, ref)

    print("KERNEL_OK")
</pallas_src>

<mosaic_0001>
module attributes {stable_mosaic.version = 11 : i64} {
  func.func @_ce_kernel(%arg0: i32, %arg1: i32, %arg2: memref<1x4x256xf32, #tpu.memory_space<vmem>>, %arg3: memref<1x1x256xi32, #tpu.memory_space<vmem>>, %arg4: memref<1x1x128xf32, #tpu.memory_space<vmem>>, %arg5: memref<1x1x128xf32, #tpu.memory_space<vmem>>, %arg6: memref<1x1x256xf32, #tpu.memory_space<vmem>>, %arg7: memref<1x1x256xf32, #tpu.memory_space<vmem>>) attributes {dimension_semantics = [#tpu.dimension_semantics<parallel>, #tpu.dimension_semantics<arbitrary>], iteration_bounds = array<i64: 2, 1>, scalar_prefetch = 0 : i64, scratch_operands = 2 : i64, tpu.core_type = #tpu.core_type<tc>, window_params = [{transform_indices = @transform_0, window_bounds = array<i64: 1, 4, 256>}, {transform_indices = @transform_1, window_bounds = array<i64: 1, 1, 256>}, {transform_indices = @transform_2, window_bounds = array<i64: 1, 1, 128>}, {transform_indices = @transform_3, window_bounds = array<i64: 1, 1, 128>}]} {
    %c0_i32 = arith.constant 0 : i32
    %0 = arith.cmpi eq, %arg1, %c0_i32 : i32
    %1 = arith.extui %0 : i1 to i32
    %c0_i32_0 = arith.constant 0 : i32
    %2 = arith.cmpi ne, %1, %c0_i32_0 : i32
    scf.if %2 {
      %cst_24 = arith.constant 0.000000e+00 : f32
      %36 = vector.broadcast %cst_24 : f32 to vector<1x1x256xf32>
      %c0_25 = arith.constant 0 : index
      %c0_26 = arith.constant 0 : index
      %c0_27 = arith.constant 0 : index
      %37 = vector.load %arg6[%c0_25, %c0_26, %c0_27] : memref<1x1x256xf32, #tpu.memory_space<vmem>>, vector<1x1x256xf32>
      tpu.vector_store %arg6[%c0_25, %c0_26, %c0_27], %36 {strides = array<i32>} : memref<1x1x256xf32, #tpu.memory_space<vmem>>, vector<1x1x256xf32>,
      %cst_28 = arith.constant 0.000000e+00 : f32
      %38 = vector.broadcast %cst_28 : f32 to vector<1x1x256xf32>
      %c0_29 = arith.constant 0 : index
      %c0_30 = arith.constant 0 : index
      %c0_31 = arith.constant 0 : index
      %39 = vector.load %arg7[%c0_29, %c0_30, %c0_31] : memref<1x1x256xf32, #tpu.memory_space<vmem>>, vector<1x1x256xf32>
      tpu.vector_store %arg7[%c0_29, %c0_30, %c0_31], %38 {strides = array<i32>} : memref<1x1x256xf32, #tpu.memory_space<vmem>>, vector<1x1x256xf32>,
    } else {
    }
    %c0 = arith.constant 0 : index
    %c0_1 = arith.constant 0 : index
    %c0_2 = arith.constant 0 : index
    %3 = vector.load %arg2[%c0, %c0_1, %c0_2] : memref<1x4x256xf32, #tpu.memory_space<vmem>>, vector<1x4x256xf32>
    %c0_3 = arith.constant 0 : index
    %c0_4 = arith.constant 0 : index
    %c0_5 = arith.constant 0 : index
    %4 = vector.load %arg3[%c0_3, %c0_4, %c0_5] : memref<1x1x256xi32, #tpu.memory_space<vmem>>, vector<1x1x256xi32>
    %cst = arith.constant dense<0xFF800000> : vector<1x256xf32>
    %5 = vector.multi_reduction <maximumf>, %3, %cst [1] : vector<1x4x256xf32> to vector<1x256xf32>
    %6 = vector.shape_cast %5 : vector<1x256xf32> to vector<1x1x256xf32>
    %7 = vector.broadcast %6 : vector<1x1x256xf32> to vector<1x4x256xf32>
    %8 = arith.subf %3, %7 : vector<1x4x256xf32>
    %9 = math.exp %8 : vector<1x4x256xf32>
    %cst_6 = arith.constant dense<0.000000e+00> : vector<1x256xf32>
    %10 = vector.multi_reduction <add>, %9, %cst_6 [1] : vector<1x4x256xf32> to vector<1x256xf32>
    %11 = vector.shape_cast %10 : vector<1x256xf32> to vector<1x1x256xf32>
    %12 = tpu.iota {dimensions = array<i32: 1>} : vector<1x4x256xi32>
    %13 = vector.broadcast %4 : vector<1x1x256xi32> to vector<1x4x256xi32>
    %14 = arith.cmpi eq, %12, %13 : vector<1x4x256xi32>
    %cst_7 = arith.constant 0.000000e+00 : f32
    %15 = vector.broadcast %cst_7 : f32 to vector<1x4x256xf32>
    %16 = arith.select %14, %8, %15 : vector<1x4x256xi1>, vector<1x4x256xf32>
    %cst_8 = arith.constant dense<0.000000e+00> : vector<1x256xf32>
    %17 = vector.multi_reduction <add>, %16, %cst_8 [1] : vector<1x4x256xf32> to vector<1x256xf32>
    %18 = vector.shape_cast %17 : vector<1x256xf32> to vector<1x1x256xf32>
    %19 = math.log %11 : vector<1x1x256xf32>
    %20 = arith.subf %19, %18 : vector<1x1x256xf32>
    %c-100_i32 = arith.constant -100 : i32
    %21 = vector.broadcast %c-100_i32 : i32 to vector<1x1x256xi32>
    %22 = arith.cmpi ne, %4, %21 : vector<1x1x256xi32>
    %c0_9 = arith.constant 0 : index
    %c0_10 = arith.constant 0 : index
    %c0_11 = arith.constant 0 : index
    %23 = vector.load %arg6[%c0_9, %c0_10, %c0_11] : memref<1x1x256xf32, #tpu.memory_space<vmem>>, vector<1x1x256xf32>
    %cst_12 = arith.constant 0.000000e+00 : f32
    %24 = vector.broadcast %cst_12 : f32 to vector<1x1x256xf32>
    %25 = arith.select %22, %20, %24 : vector<1x1x256xi1>, vector<1x1x256xf32>
    %26 = arith.addf %23, %25 : vector<1x1x256xf32>
    %c0_13 = arith.constant 0 : index
    %c0_14 = arith.constant 0 : index
    %c0_15 = arith.constant 0 : index
    %27 = vector.load %arg6[%c0_13, %c0_14, %c0_15] : memref<1x1x256xf32, #tpu.memory_space<vmem>>, vector<1x1x256xf32>
    tpu.vector_store %arg6[%c0_13, %c0_14, %c0_15], %26 {strides = array<i32>} : memref<1x1x256xf32, #tpu.memory_space<vmem>>, vector<1x1x256xf32>,
    %c0_16 = arith.constant 0 : index
    %c0_17 = arith.constant 0 : index
    %c0_18 = arith.constant 0 : index
    %28 = vector.load %arg7[%c0_16, %c0_17, %c0_18] : memref<1x1x256xf32, #tpu.memory_space<vmem>>, vector<1x1x256xf32>
    %29 = arith.extui %22 : vector<1x1x256xi1> to vector<1x1x256xi32>
    %30 = arith.sitofp %29 : vector<1x1x256xi32> to vector<1x1x256xf32>
    %31 = arith.addf %28, %30 : vector<1x1x256xf32>
    %c0_19 = arith.constant 0 : index
    %c0_20 = arith.constant 0 : index
    %c0_21 = arith.constant 0 : index
    %32 = vector.load %arg7[%c0_19, %c0_20, %c0_21] : memref<1x1x256xf32, #tpu.memory_space<vmem>>, vector<1x1x256xf32>
    tpu.vector_store %arg7[%c0_19, %c0_20, %c0_21], %31 {strides = array<i32>} : memref<1x1x256xf32, #tpu.memory_space<vmem>>, vector<1x1x256xf32>,
    %c0_i32_22 = arith.constant 0 : i32
    %33 = arith.cmpi eq, %arg1, %c0_i32_22 : i32
    %34 = arith.extui %33 : i1 to i32
    %c0_i32_23 = arith.constant 0 : i32
    %35 = arith.cmpi ne, %34, %c0_i32_23 : i32
    scf.if %35 {
      %c0_24 = arith.constant 0 : index
      %c0_25 = arith.constant 0 : index
      %c0_26 = arith.constant 0 : index
      %36 = vector.load %arg6[%c0_24, %c0_25, %c0_26] : memref<1x1x256xf32, #tpu.memory_space<vmem>>, vector<1x1x256xf32>
      %37 = vector.shape_cast %36 : vector<1x1x256xf32> to vector<1x1x1x256xf32>
      %cst_27 = arith.constant dense<0.000000e+00> : vector<1xf32>
      %38 = vector.multi_reduction <add>, %37, %cst_27 [1, 2, 3] : vector<1x1x1x256xf32> to vector<1xf32>
      %39 = vector.shape_cast %38 : vector<1xf32> to vector<1x1x1x1xf32>
      %40 = vector.extract %39[0, 0, 0, 0] : f32 from vector<1x1x1x1xf32>
      %41 = vector.broadcast %40 : f32 to vector<1x1x128xf32>
      %c0_28 = arith.constant 0 : index
      %c0_29 = arith.constant 0 : index
      %c0_30 = arith.constant 0 : index
      %42 = vector.load %arg4[%c0_28, %c0_29, %c0_30] : memref<1x1x128xf32, #tpu.memory_space<vmem>>, vector<1x1x128xf32>
      tpu.vector_store %arg4[%c0_28, %c0_29, %c0_30], %41 {strides = array<i32>} : memref<1x1x128xf32, #tpu.memory_space<vmem>>, vector<1x1x128xf32>,
      %c0_31 = arith.constant 0 : index
      %c0_32 = arith.constant 0 : index
      %c0_33 = arith.constant 0 : index
      %43 = vector.load %arg7[%c0_31, %c0_32, %c0_33] : memref<1x1x256xf32, #tpu.memory_space<vmem>>, vector<1x1x256xf32>
      %44 = vector.shape_cast %43 : vector<1x1x256xf32> to vector<1x1x1x256xf32>
      %cst_34 = arith.constant dense<0.000000e+00> : vector<1xf32>
      %45 = vector.multi_reduction <add>, %44, %cst_34 [1, 2, 3] : vector<1x1x1x256xf32> to vector<1xf32>
      %46 = vector.shape_cast %45 : vector<1xf32> to vector<1x1x1x1xf32>
      %47 = vector.extract %46[0, 0, 0, 0] : f32 from vector<1x1x1x1xf32>
      %48 = vector.broadcast %47 : f32 to vector<1x1x128xf32>
      %c0_35 = arith.constant 0 : index
      %c0_36 = arith.constant 0 : index
      %c0_37 = arith.constant 0 : index
      %49 = vector.load %arg5[%c0_35, %c0_36, %c0_37] : memref<1x1x128xf32, #tpu.memory_space<vmem>>, vector<1x1x128xf32>
      tpu.vector_store %arg5[%c0_35, %c0_36, %c0_37], %48 {strides = array<i32>} : memref<1x1x128xf32, #tpu.memory_space<vmem>>, vector<1x1x128xf32>,
    } else {
    }
    return
  }
  func.func @transform_0(%arg0: i32, %arg1: i32) -> (i32, i32, i32) {
    %c0_i32 = arith.constant 0 : i32
    %c0_i32_0 = arith.constant 0 : i32
    return %arg0, %c0_i32, %arg1 : i32, i32, i32
  }
  func.func @transform_1(%arg0: i32, %arg1: i32) -> (i32, i32, i32) {
    %c0_i32 = arith.constant 0 : i32
    %c0_i32_0 = arith.constant 0 : i32
    return %arg0, %c0_i32, %arg1 : i32, i32, i32
  }
  func.func @transform_2(%arg0: i32, %arg1: i32) -> (i32, i32, i32) {
    %c0_i32 = arith.constant 0 : i32
    %c0_i32_0 = arith.constant 0 : i32
    %c0_i32_1 = arith.constant 0 : i32
    return %arg0, %c0_i32, %c0_i32_0 : i32, i32, i32
  }
  func.func @transform_3(%arg0: i32, %arg1: i32) -> (i32, i32, i32) {
    %c0_i32 = arith.constant 0 : i32
    %c0_i32_0 = arith.constant 0 : i32
    %c0_i32_1 = arith.constant 0 : i32
    return %arg0, %c0_i32, %c0_i32_0 : i32, i32, i32
  }
}

</mosaic_0001>

<bundles_post_ra>
// kernel: tpu_custom_call.1
= control target key start
LH: loop header
LB: loop body
LE: loop exit
PB: predicated region body
PF: predicated region fallthrough
CT: control target
= control target key end

     0   :  { %9 = vsyncpa [#allocation5], 0  ;;  %s1144_s0 = inlined_call_operand.hbm [shape: f32[2,4,256], index: 0, kind: input, shape index: {}]   ;;  %s1145_s1 = inlined_call_operand.hbm [shape: s32[2,1,256], index: 1, kind: input, shape index: {}]   ;;  %s1146_s2 = inlined_call_operand.hbm [shape: f32[2,1,128], index: 2, kind: output, shape index: {0}]   ;;  %s1147_s3 = inlined_call_operand.hbm [shape: f32[2,1,128], index: 3, kind: output, shape index: {1}]  }
   0x1   :  { %11 = vsyncpa [#allocation5 + $0x1], 0 }
   0x2   :  { %12 = vsyncpa [#allocation8], 0 }
   0x3   :  { %14 = vsyncpa [#allocation8 + $0x1], 0 }
   0x4   :  { %15 = vsyncpa [#allocation6], 0 }
   0x5   :  { %17 = vsyncpa [#allocation6 + $0x1], 0 }
   0x6   :  { %18 = vsyncpa [#allocation11], 0 }
   0x7   :  { %20 = vsyncpa [#allocation11 + $0x1], 0  ;;  %s899_s12 = smov 0   ;;  %s901_s13 = smov 0  }
   0x8   :  { %s903_s14 = smov 0   ;;  %s905_s15 = smov 0  }
   0x9   :  { %s907_s16 = smov 0   ;;  %s909_s17 = smov 0  }
   0xa LB: > { %s596_s18 = sadd.s32 4294967295, %s871_s17   ;;  %s597_s19 = sadd.s32 4294967294, %s871_s17   ;;  %s871_s17 = sphi %s909_s17, %s26_s17   ;;  %s867_s16 = sphi %s907_s16, %s1161_s16   ;;  %s863_s15 = sphi %s905_s15, %s1160_s15   ;;  %s859_s14 = sphi %s903_s14, %s1159_s14   ;;  %s855_s13 = sphi %s901_s13, %s1158_s13   ;;  %s851_s12 = sphi %s899_s12, %s1157_s12  }
   0xb   : > { %s38_s20 = sadd.s32 1, %s867_s16  ;;  %s47_s21 = sadd.s32 1, %s859_s14 }
   0xc   : > { %p40_p0 = scmp.ge.s32.totalorder %s38_s20, 2  ;;  %p54_p1 = scmp.ne.s32.totalorder %s859_s14, %s855_s13 }
   0xd   : > { %p55_p2 = scmp.eq.s32.totalorder %s871_s17, 0  ;;  %p60_p3 = scmp.ne.s32.totalorder %s855_s13, %s851_s12 }
   0xe   : > { %s1163_s20 = smov (%p40_p0, %s38_s20), 0  ;;  %p61_p5 = scmp.eq.s32.totalorder %s596_s18, 0 }
   0xf   : > { %p940_p4 = por %p55_p2, %p54_p1  ;;  %s42_s23 = ssub.s32 %s867_s16, %s1163_s20 }
  0x10   : > { %p112_p6 = scmp.eq.s32.totalorder %s596_s18, 1  ;;  %p45_p7 = scmp.eq.s32.totalorder %s42_s23, 0 }
  0x11   : > { %p946_p8 = por %p61_p5, %p60_p3  ;;  %p118_p10 = scmp.eq.s32.totalorder %s597_s19, 1 }
  0x12   : > { %p950_p9 = por %p112_p6, %p54_p1  ;;  %p642_p13 = scmp.lt.s32.totalorder %s871_s17, 2 }
  0x13   : > { %s955_s26 = scalar_select %p45_p7, %s859_s14, %s47_s21  }
  0x14   : > { %p957_p11 = por %p118_p10, %p60_p3  ;;  %s964_s28 = sand.u32 1, %s859_s14  }
  0x15   : > { %s600_s29 = sshll.u32 %s964_s28, 3  ;;  %s614_s30 = sshll.u32 %s867_s16, 7 }
  0x16   : > { %s176_s6 = scalar_lea.hbm %s1144_s0, %s614_s30  ;;  %s168_s7 = scalar_lea.vmem [#allocation4], %s600_s29 }
  0x17   : > { %s178_s8 = sshll.u32 %s168_s7, 4  ;;  %p973_p0 = pnand %p642_p13, %p940_p4  ;;  %s179_s8 = int_to_ptr.vmem [resolvable:$true] %s178_s8 }
  0x18   : > { %p606_p1 = scmp.ge.s32.totalorder %s871_s17, 1  ;;  %p204_p2 = scmp.lt.s32.totalorder %s871_s17, 3 }
  0x19   : > { %s165_s10 = scalar_lea.sflag [#allocation5], %s964_s28  ;;  %p703_p3 = pneg %p973_p0 }
  0x1a   : > { %s714_s11 = scalar_lea.vmem %s179_s8, 128  ;;  %s873_s18 = smov [#allocation4]  }
  0x1b   : > { %p715_p5 = scmp.ne.s32.totalorder %s179_s8, %s714_s11  ;;  %s719_s19 = sshll.u32 %s873_s18, 4  ;;  %s720_s19 = int_to_ptr.vmem [resolvable:$false] %s719_s19 }
  0x1c   : > { %s721_s21 = scalar_lea.vmem %s720_s19, 256  ;;  %p722_p4 = scmp.lt.s32.totalorder %s179_s8, %s720_s19 }
  0x1d   : > { %p717_p6 = pnand %p715_p5, %p703_p3  ;;  %p723_p10 = scmp.lt.s32.totalorder %s721_s21, %s714_s11 }
  0x1f   : > { %p718_p7 = pneg %p717_p6  ;;  %p724_p13 = por %p723_p10, %p722_p4 }
  0x21   : > { %p725_p12 = pnand %p724_p13, %p718_p7 }
  0x23   : > { %728 = shalt.err (!%p725_p12)
}
  0x24   : > { %631 = dma.hbm_to_vmem [thread:$0]  (!%p973_p0), %s176_s6, 128, %s179_s8, %s165_s10  }
  0x25   : > { %p991_p5 = pnand %p606_p1, %p204_p2  ;;  %s603_s23 = sshll.u32 %s964_s28, 1 }
  0x26   : > { %s615_s29 = sshll.u32 %s867_s16, 5  ;;  %s189_s7 = scalar_lea.vmem [#allocation7], %s603_s23 }
  0x27   : > { %s197_s5 = scalar_lea.hbm %s1145_s1, %s615_s29  ;;  %s199_s11 = sshll.u32 %s189_s7, 4  ;;  %s200_s11 = int_to_ptr.vmem [resolvable:$true] %s199_s11 }
  0x28   : > { %s186_s18 = scalar_lea.sflag [#allocation8], %s964_s28  ;;  %s742_s19 = scalar_lea.vmem %s200_s11, 32 }
  0x29   : > { %p743_p12 = scmp.ne.s32.totalorder %s200_s11, %s742_s19  ;;  %s874_s6 = smov [#allocation7]  }
  0x2a   : > { %s747_s8 = sshll.u32 %s874_s6, 4  ;;  %s748_s8 = int_to_ptr.vmem [resolvable:$false] %s747_s8 }
  0x2b   : > { %p745_p6 = pnand %p743_p12, %p703_p3  ;;  %s749_s10 = scalar_lea.vmem %s748_s8, 64 }
  0x2c   : > { %p750_p1 = scmp.lt.s32.totalorder %s200_s11, %s748_s8  ;;  %p751_p2 = scmp.lt.s32.totalorder %s749_s10, %s742_s19 }
  0x2d   : > { %p746_p7 = pneg %p745_p6 }
  0x2e   : > { %p752_p4 = por %p751_p2, %p750_p1 }
  0x30   : > { %p753_p10 = pnand %p752_p4, %p746_p7 }
  0x32   : > { %756 = shalt.err (!%p753_p10)
}
  0x33   : > { %634 = dma.hbm_to_vmem [thread:$0]  (!%p973_p0), %s197_s5, 32, %s200_s11, %s186_s18  }
  0x34   : > { %208 = sbr.rel (%p991_p5) target bundleno = 389 (0x185), region = 28  ;;  %s1009_s28 = sand.u32 (!%p991_p5), 1, %s855_s13  }
  0x35   : > { %s607_s21 = sshll.u32 (!%p991_p5), %s1009_s28, 3  ;;  %s211_s23 = scalar_lea.sflag (!%p991_p5), [#allocation5], %s1009_s28 }
  0x36   : > { %s214_s29 = scalar_lea.vmem (!%p991_p5), [#allocation4], %s607_s21 }
  0x39   : > { %834 = dma.done.wait (%p946_p8), %s211_s23, 128  }
  0x3a   : > { %836 = vsyncadd (%p946_p8), %s211_s23, 4294967168  ;;  %s608_s9 = sshll.u32 %s1009_s28, 1  ;;  %s220_s22 = scalar_lea.sflag [#allocation8], %s1009_s28 }
  0x3b   : > { %s223_s30 = scalar_lea.vmem [#allocation7], %s608_s9 }
  0x3c   : > { %838 = dma.done.wait (%p946_p8), %s220_s22, 32  }
  0x3d   : > { %840 = vsyncadd (%p946_p8), %s220_s22, 4294967264  ;;  %v260_v0 = vlaneseq  ;;  %v875_v2 = vmov 0.0   ;;  %vm271_vm1 = vcmask 1043456   ;;  %v266_v3 = vld [vmem:[%s214_s29] sm:$0xff]  ;;  %v1031_v4 = vld [vmem:[%s223_s30] sm:$0x3] }
  0x3e   : > { %v269_v5 = vcombine.high %v266_v3, %v266_v3  ;;  %v272_v6 = vsel %vm271_vm1, %v266_v3, -inf  ;;  %vm347_vm2 = vcmp.ne.s32.totalorder %v1031_v4, 4294967196  ;;  %v876_v62 = vmov 1966171168   ;;  %s610_s24 = sshll.u32 %s863_s15, 4  ;;  %s247_s4 = scalar_lea.vmem [#allocation9], %s1009_s28 }
  0x3f   : > { %vm1023_vm0 = vcmp.lt.s32.totalorder %v260_v0, 256  ;;  %v273_v7 = vrot.slane %v272_v6, 4  ;;  %v609_v10 = vsel %vm347_vm2, 1.0, %v875_v2  ;;  %v311_v26 = vshrl.u32 %v260_v0, 7  ;;  %s452_s5 = sshll.u32 %s247_s4, 4  ;;  %s253_s7 = scalar_lea.vmem [#allocation10], %s1009_s28  ;;  %s1072_s5 = int_to_ptr.vmem [resolvable:$true] %s452_s5 }
  0x40   : > { %264 = vst.msk [vmem:[#allocation2] sm:$0x3] %vm1023_vm0, %v875_v2  ;;  %265 = vst.msk [vmem:[#allocation3] sm:$0x3] %vm1023_vm0, %v875_v2  ;;  %v279_v8 = vsel %vm271_vm1, %v269_v5, -inf  ;;  %v353_v63 = vunpack.c.l.s4 %v876_v62  ;;  %vm394_vm5 = vcmask 1040384   ;;  %s1070_s6 = scalar_lea.hbm %s1146_s2, %s610_s24 }
  0x41   : > { %v274_v11 = vmax.f32 %v272_v6, %v273_v7  ;;  %v280_v12 = vrot.slane %v279_v8, 4  ;;  %v1040_v27 = vsub.s32 0, %v311_v26  ;;  %v1042_v28 = vsub.s32 1, %v311_v26  ;;  %s465_s11 = sshll.u32 %s253_s7, 4  ;;  %s436_s10 = scalar_lea.sflag [#allocation6], %s1009_s28  ;;  %s1074_s11 = int_to_ptr.vmem [resolvable:$true] %s465_s11 }
  0x42   : > { %v354_v6 = vunpack.c.0.s8 %v353_v63  ;;  %s757_s21 = scalar_lea.vmem %s1072_s5, 16  ;;  %s877_s23 = smov [#allocation9]  }
  0x43   : > { %v275_v14 = vrot.slane %v274_v11, 2  ;;  %v281_v15 = vmax.f32 %v279_v8, %v280_v12  ;;  %v315_v29 = vrot.slane %v1031_v4, %v1040_v27  ;;  %v319_v30 = vrot.slane %v1031_v4, %v1042_v28  ;;  %p758_p8 = scmp.ne.s32.totalorder %s1072_s5, %s757_s21  ;;  %s761_s29 = sshll.u32 %s877_s23, 4  ;;  %s762_s29 = int_to_ptr.vmem [resolvable:$false] %s761_s29 }
  0x44   : > { %s763_s9 = scalar_lea.vmem %s762_s29, 32  ;;  %p764_p13 = scmp.lt.s32.totalorder %s1072_s5, %s762_s29 }
  0x45   : > { %v276_v16 = vmax.f32 %v274_v11, %v275_v14  ;;  %v282_v17 = vrot.slane %v281_v15, 2  ;;  %vm320_vm3 = vcmp.eq.s32.totalorder %v311_v26, %v315_v29  ;;  %vm321_vm4 = vcmp.eq.s32.totalorder %v311_v26, %v319_v30  ;;  %p759_p0 = pnand %p758_p8, %p950_p9  ;;  %p765_p5 = scmp.lt.s32.totalorder %s763_s9, %s757_s21 }
  0x46   : > { %v357_v11 = vsub.s32 %v354_v6, %v311_v26 }
  0x47   : > { %v374_v9 = vld [vmem:[#allocation3] sm:$0x3]  ;;  %v277_v18 = vrot.slane %v276_v16, 1  ;;  %v283_v19 = vmax.f32 %v281_v15, %v282_v17  ;;  %v348_v14 = vld [vmem:[#allocation2] sm:$0x3]  ;;  %p760_p3 = pneg %p759_p0  ;;  %p766_p12 = por %p765_p5, %p764_p13 }
  0x48   : > { %v377_v13 = vadd.f32 %v609_v10, %v374_v9 }
  0x49   : > { %v278_v20 = vmax.f32 %v276_v16, %v277_v18  ;;  %v284_v21 = vrot.slane %v283_v19, 1  ;;  %p767_p6 = pnand %p766_p12, %p760_p3 }
  0x4a   : > { %378 = vst.msk [vmem:[#allocation3] sm:$0x3] %vm1023_vm0, %v377_v13 }
  0x4b   : > { %v285_v22 = vmax.f32 %v283_v19, %v284_v21 }
  0x4d   : > { %v288_v23 = vcombine.low %v278_v20, %v285_v22 }
  0x4f   : > { %v290_v24 = vsub.f32 %v266_v3, %v288_v23 }
  0x51   : > { %v291_v25 = vmul.f32 1.442695, %v290_v24  ;;  %v323_v31 = vcombine.high %v290_v24, %v290_v24  ;;  %v325_v33 = vsel %vm320_vm3, %v290_v24, 0.0  ;;  %v409_v18 = vld [vmem:[#allocation3] sm:$0x3] }
  0x52   : > { %v327_v39 = vsel %vm271_vm1, %v325_v33, 0.0  ;;  %v414_v19 = vrot.slane %v409_v18, %v1040_v27  ;;  %v418_v20 = vrot.slane %v409_v18, %v1042_v28 }
  0x53   : > { %695 = vpow2.f32 %v291_v25  ;;  %v326_v37 = vsel %vm321_vm4, %v323_v31, 0.0  ;;  %v328_v45 = vrot.slane %v327_v39, 4 }
  0x54   : > { %v334_v42 = vsel %vm271_vm1, %v326_v37, 0.0  ;;  %v421_v26 = vsel %vm394_vm5, %v414_v19, 0.0  ;;  %v422_v4 = vsel %vm394_vm5, %v418_v20, 0.0 }
  0x55   : > { %v335_v48 = vrot.slane %v334_v42, 4  ;;  %v329_v51 = vadd.f32 %v328_v45, %v327_v39  ;;  %v423_v30 = vadd.f32 %v422_v4, %v421_v26 }
  0x57   : > { %v336_v54 = vadd.f32 %v335_v48, %v334_v42  ;;  %v330_v56 = vrot.slane %v329_v51, 2 }
  0x59   : > { %v337_v57 = vrot.slane %v336_v54, 2  ;;  %v331_v58 = vadd.f32 %v330_v56, %v329_v51 }
  0x5b   : > { %v338_v59 = vadd.f32 %v337_v57, %v336_v54  ;;  %v332_v60 = vrot.slane %v331_v58, 1 }
  0x5d   : > { %v339_v61 = vrot.slane %v338_v59, 1  ;;  %v333_v0 = vadd.f32 %v332_v60, %v331_v58 }
  0x5f   : > { %v340_v3 = vadd.f32 %v339_v61, %v338_v59 }
  0x60   : > { %v696_v32 = vpop.eup %695 }
  0x61   : > { %v294_v34 = vcombine.high %v696_v32, %v696_v32  ;;  %v296_v35 = vsel %vm271_vm1, %v696_v32, 0.0 }
  0x62   : > { %v297_v36 = vrot.slane %v296_v35, 4 }
  0x63   : > { %v303_v38 = vsel %vm271_vm1, %v294_v34, 0.0 }
  0x64   : > { %v298_v40 = vadd.f32 %v297_v36, %v296_v35  ;;  %v304_v41 = vrot.slane %v303_v38, 4 }
  0x66   : > { %v299_v43 = vrot.slane %v298_v40, 2  ;;  %v305_v44 = vadd.f32 %v304_v41, %v303_v38 }
  0x68   : > { %v300_v46 = vadd.f32 %v299_v43, %v298_v40  ;;  %v306_v47 = vrot.slane %v305_v44, 2 }
  0x6a   : > { %v301_v49 = vrot.slane %v300_v46, 1  ;;  %v307_v50 = vadd.f32 %v306_v47, %v305_v44 }
  0x6c   : > { %v302_v52 = vadd.f32 %v301_v49, %v300_v46  ;;  %v308_v53 = vrot.slane %v307_v50, 1 }
  0x6e   : > { %v309_v55 = vadd.f32 %v308_v53, %v307_v50  ;;  %697 = vlog2.f32 %v302_v52 }
  0x70   : > { %699 = vlog2.f32 %v309_v55 }
  0x7b   : > { %v698_v2 = vpop.eup %697 }
  0x7c   : > { %v342_v5 = vmul.f32 0.6931472, %v698_v2 }
  0x7d   : > { %v700_v7 = vpop.eup %699 }
  0x7e   : > { %v344_v8 = vmul.f32 0.6931472, %v700_v7  ;;  %v345_v9 = vsub.f32 %v342_v5, %v333_v0 }
  0x80   : > { %v346_v10 = vsub.f32 %v344_v8, %v340_v3 }
  0x82   : > { %v351_v12 = vcombine.low %v345_v9, %v346_v10 }
  0x84   : > { %v358_v13 = vrot.slane %v351_v12, %v357_v11 }
  0x86   : > { %v365_v15 = vrot.slane %v358_v13, %v357_v11 }
  0x88   : > { %v367_v16 = vsel %vm347_vm2, %v365_v15, 0.0 }
  0x89   : > { %v368_v17 = vadd.f32 %v367_v16, %v348_v14 }
  0x8b   : > { %373 = vst.msk [vmem:[#allocation2] sm:$0x3] %vm1023_vm0, %v368_v17 }
  0x92   : > { %v382_v21 = vld [vmem:[#allocation2] sm:$0x3] }
  0x93   : > { %v387_v22 = vrot.slane %v382_v21, %v1040_v27  ;;  %v391_v23 = vrot.slane %v382_v21, %v1042_v28 }
  0x95   : > { %v395_v24 = vsel %vm394_vm5, %v387_v22, 0.0  ;;  %v396_v25 = vsel %vm394_vm5, %v391_v23, 0.0 }
  0x96   : > { %v397_v29 = vadd.f32 %v396_v25, %v395_v24 }
  0x98   : > { %398 = vadd.xlane.f32.xlu0 %v397_v29 }
  0x9c   : > { %424 = vadd.xlane.f32.xlu0 %v423_v30 }
 0x121   : > { %v399_v1 = vpop.xlane.xlu0 %398 }
 0x122   : > { %v400_v31 = vrot.slane %v399_v1, 4 }
 0x124   : > { %v401_v32 = vadd.f32 %v400_v31, %v399_v1 }
 0x125   : > { %v425_v33 = vpop.xlane.xlu0 %424 }
 0x126   : > { %v402_v34 = vrot.slane %v401_v32, 2  ;;  %v426_v27 = vrot.slane %v425_v33, 4 }
 0x128   : > { %v427_v28 = vadd.f32 %v426_v27, %v425_v33  ;;  %v403_v35 = vadd.f32 %v402_v34, %v401_v32 }
 0x12a   : > { %v428_v36 = vrot.slane %v427_v28, 2  ;;  %v404_v37 = vrot.slane %v403_v35, 1 }
 0x12c   : > { %v429_v38 = vadd.f32 %v428_v36, %v427_v28  ;;  %v405_v39 = vadd.f32 %v404_v37, %v403_v35 }
 0x12e   : > { %616 = vpush %v405_v39  ;;  %v430_v40 = vrot.slane %v429_v38, 1 }
 0x130   : > { %v431_v41 = vadd.f32 %v430_v40, %v429_v38 }
 0x132   : > { %618 = vpush %v431_v41 }
 0x15f   : > { %s617_s8 = spop %616 }
 0x160   : > { %v407_v42 = vstv %s617_s8 }
 0x161   : > { %408 = vst [vmem:[%s247_s4] sm:$0x1] %v407_v42 }
 0x162   : > { %770 = shalt.err (!%p767_p6)
}
 0x163   : > { %s771_s22 = scalar_lea.hbm %s1070_s6, 16  ;;  %s775_s18 = scalar_lea.hbm %s1146_s2, 32 }
 0x164   : > { %p772_p7 = scmp.ne.s32.totalorder %s1070_s6, %s771_s22  ;;  %p776_p4 = scmp.lt.s32.totalorder %s1070_s6, %s1146_s2 }
 0x165   : > { %p777_p10 = scmp.lt.s32.totalorder %s775_s18, %s771_s22 }
 0x166   : > { %p773_p1 = pnand %p772_p7, %p950_p9 }
 0x167   : > { %p778_p8 = por %p777_p10, %p776_p4 }
 0x168   : > { %p774_p2 = pneg %p773_p1 }
 0x16a   : > { %p779_p0 = pnand %p778_p8, %p774_p2 }
 0x16c   : > { %782 = shalt.err (!%p779_p0)
}
 0x16d   : > { %624 = dma.vmem_to_hbm [thread:$0]  (%p950_p9), %s1072_s5, 16, %s1070_s6, %s436_s10  }
 0x16e   : > { %s619_s21 = spop %618  ;;  %s463_s9 = scalar_lea.hbm %s1147_s3, %s610_s24 }
 0x16f   : > { %v433_v43 = vstv %s619_s21  ;;  %s440_s22 = scalar_lea.sflag [#allocation11], %s1009_s28  ;;  %s783_s30 = scalar_lea.vmem %s1074_s11, 16 }
 0x170   : > { %434 = vst [vmem:[%s253_s7] sm:$0x1] %v433_v43  ;;  %p784_p3 = scmp.ne.s32.totalorder %s1074_s11, %s783_s30  ;;  %s878_s4 = smov [#allocation10]  }
 0x171   : > { %s787_s18 = sshll.u32 %s878_s4, 4  ;;  %s788_s18 = int_to_ptr.vmem [resolvable:$false] %s787_s18 }
 0x172   : > { %p785_p13 = pnand %p784_p3, %p950_p9  ;;  %s789_s19 = scalar_lea.vmem %s788_s18, 32 }
 0x173   : > { %p790_p12 = scmp.lt.s32.totalorder %s1074_s11, %s788_s18  ;;  %p791_p6 = scmp.lt.s32.totalorder %s789_s19, %s783_s30 }
 0x174   : > { %p786_p5 = pneg %p785_p13 }
 0x175   : > { %p792_p7 = por %p791_p6, %p790_p12 }
 0x177   : > { %p793_p1 = pnand %p792_p7, %p786_p5 }
 0x179   : > { %796 = shalt.err (!%p793_p1)
}
 0x17a   : > { %s797_s15 = scalar_lea.hbm %s463_s9, 16  ;;  %s801_s5 = scalar_lea.hbm %s1147_s3, 32 }
 0x17b   : > { %p798_p2 = scmp.ne.s32.totalorder %s463_s9, %s797_s15  ;;  %p802_p8 = scmp.lt.s32.totalorder %s463_s9, %s1147_s3 }
 0x17c   : > { %p803_p0 = scmp.lt.s32.totalorder %s801_s5, %s797_s15 }
 0x17d   : > { %p799_p4 = pnand %p798_p2, %p950_p9 }
 0x17e   : > { %p804_p3 = por %p803_p0, %p802_p8 }
 0x17f   : > { %p800_p10 = pneg %p799_p4 }
 0x181   : > { %p805_p13 = pnand %p804_p3, %p800_p10 }
 0x183   : > { %808 = shalt.err (!%p805_p13)
}
 0x184   : > { %625 = dma.vmem_to_hbm [thread:$0]  (%p950_p9), %s1074_s11, 16, %s463_s9, %s440_s22  }
 0x185 PF: > { %s477_s10 = sand.u32 1, %s851_s12   ;;  %p1156_p5 = scmp.ge.s32.totalorder %s871_s17, 2 }
 0x186   : > { %s478_s8 = scalar_lea.sflag [#allocation6], %s477_s10 }
 0x187   : > { %p636_p12 = pnand %p1156_p5, %p957_p11 }
 0x189   : > { %p637_p6 = pneg %p636_p12 }
 0x18b   : > { %842 = dma.done.wait (%p637_p6), %s478_s8, 16  }
 0x18c   : > { %844 = vsyncadd (%p637_p6), %s478_s8, 4294967280  ;;  %s486_s21 = scalar_lea.sflag [#allocation11], %s477_s10 }
 0x18d   : > { %846 = dma.done.wait (%p637_p6), %s486_s21, 16  }
 0x18e   : > { %848 = vsyncadd (%p637_p6), %s486_s21, 4294967280  ;;  %s26_s17 = sadd.s32 1, %s871_s17   ;;  %s1157_s12 = smov %s855_s13 }
 0x18f   : > { %p23_p7 = scmp.ge.s32.totalorder %s26_s17, 4   ;;  %s1158_s13 = smov %s859_s14 }
 0x190   : > { %s1159_s14 = smov %s955_s26  ;;  %s1160_s15 = smov %s867_s16 }
 0x191   : > { %s1161_s16 = smov %s1163_s20  ;;  %25 = sbr.rel (!%p23_p7) target bundleno = 10 (0xa), region = 111 }
 0x196   :  { %490 = vsyncpa [#allocation5], 1 }
 0x197   :  { %492 = vsyncpa [#allocation5 + $0x1], 1 }
 0x198   :  { %493 = vsyncpa [#allocation8], 1 }
 0x199   :  { %495 = vsyncpa [#allocation8 + $0x1], 1 }
 0x19a   :  { %496 = vsyncpa [#allocation6], 1 }
 0x19b   :  { %498 = vsyncpa [#allocation6 + $0x1], 1 }
 0x19c   :  { %499 = vsyncpa [#allocation11], 1 }
 0x19d   :  { %501 = vsyncpa [#allocation11 + $0x1], 1 }

</bundles_post_ra>
